<compile_context>
chip_gen: v5e
topology: v5e:2x2
jax: 0.10.0
libtpu: 0.0.40
codegen_flags: <defaults>
</compile_context>

<pallas_src>
import functools
import math

import jax
import jax.numpy as jnp
from jax import lax
from jax.experimental import pallas as pl
from jax.experimental.pallas import tpu as pltpu


def _round_up(x, m):
    return ((x + m - 1) // m) * m


def _pad2(a, rows, cols):
    return jnp.pad(a, ((0, rows - a.shape[0]), (0, cols - a.shape[1])))


# ------------------ one-shot ontology / weight precompute ------------------ #
def precompute_kernel(ont_ref, wkv_ref, bkv_ref, wq_ref, bq_ref, wc_ref,
                      a_ref, bs_ref, vp_ref, *, scale, hp):
    """K/V projections (single fused MXU pass over [Wk|Wv]), then fold Wq and
    Wc:  A = scale*Wq@K^T,  bs = scale*bq@K^T,  V' = V@Wc.  Runs once."""
    ont = ont_ref[...]                                            # (Tp, Hp) f32
    kv = jnp.dot(ont, wkv_ref[...],
                 preferred_element_type=jnp.float32) + bkv_ref[...]
    k = kv[:, :hp]                                                # (Tp, Hp)
    v = kv[:, hp:]                                                # (Tp, Hp)
    a_ref[...] = scale * lax.dot_general(
        wq_ref[...], k, (((1,), (1,)), ((), ())),
        preferred_element_type=jnp.float32)                       # (Hp, Tp)
    bs_ref[...] = scale * lax.dot_general(
        bq_ref[...], k, (((1,), (1,)), ((), ())),
        preferred_element_type=jnp.float32)                       # (1, Tp)
    vp_ref[...] = jnp.dot(v, wc_ref[...],
                          preferred_element_type=jnp.float32)     # (Tp, Lp)


# ----------------- per-token attention + classifier kernel ----------------- #
def ner_oa_kernel(x_ref, a_ref, bs_ref, vp_ref, bc_ref, logits_ref,
                  *, t_actual, t_padded):
    """One row tile of tokens: scores = x@A + bs, masked softmax over the
    ontology axis, logits = p@V' + bc.  Dropout == identity (eval)."""
    x = x_ref[...].astype(jnp.float32)                            # (rt, Hp)

    s = jnp.dot(x, a_ref[...],
                preferred_element_type=jnp.float32) + bs_ref[...]  # (rt, Tp)
    if t_padded != t_actual:  # static branch: mask padded ontology columns
        col = lax.broadcasted_iota(jnp.int32, s.shape, 1)
        s = jnp.where(col < t_actual, s, -jnp.inf)

    # Stable softmax over the ontology (key) axis, f32 math.
    s = s - jnp.max(s, axis=-1, keepdims=True)
    p = jnp.exp(s)
    p = p * pl.reciprocal(jnp.sum(p, axis=-1, keepdims=True), approx=True)

    logits = jnp.dot(p, vp_ref[...],
                     preferred_element_type=jnp.float32) + bc_ref[...]
    logits_ref[...] = logits.astype(logits_ref.dtype)


# ------------------------------ host wrapper ------------------------------- #
def cross_att_and_classify(x, ont, params, *, row_tile=512):
    """x: (B, S, H) input hidden states; ont: (T, H) ontology hidden states."""
    B, S, H = x.shape
    T = ont.shape[0]
    L = params["wc"].shape[1]

    # Lane-dense padded sizes.  Tp is padded to 128 (use 256 on v6e/v7x for
    # large T) so the score tile, the softmax reductions and the p@V'
    # contraction are lane-dense / MXU-friendly.
    Hp = _round_up(H, 128)
    Lp = _round_up(L, 128)
    Tp = _round_up(T, 128)
    rows = B * S

    rt = min(row_tile, _round_up(rows, 16))          # multiple of 16 (bf16 pack)
    if _round_up(rows, rt) // rt < 2 and rows > 16:
        # keep >= 2 grid steps so ("parallel",) can split across v7x's 2 TCs
        rt = _round_up((rows + 1) // 2, 16)
    Rp = _round_up(rows, rt)
    n_tiles = Rp // rt

    f32 = jnp.float32

    # Zero-padded f32 operands for the one-shot precompute (zero padding is
    # exact for linear ops; padded ontology rows are masked in the kernel).
    ont_p = _pad2(ont, Tp, Hp).astype(f32)
    wkv = jnp.concatenate([_pad2(params["wk"], Hp, Hp),
                           _pad2(params["wv"], Hp, Hp)], axis=1).astype(f32)
    bkv = jnp.concatenate([_pad2(params["bk"], 1, Hp),
                           _pad2(params["bv"], 1, Hp)], axis=1).astype(f32)
    wq = _pad2(params["wq"], Hp, Hp).astype(f32)
    bq = _pad2(params["bq"], 1, Hp).astype(f32)
    wc = _pad2(params["wc"], Hp, Lp).astype(f32)
    bc = _pad2(params["bc"], 1, Lp).astype(f32)

    # 1) Precompute A / bs / V' exactly once (shared across every token row).
    a_mat, bs_vec, vp_mat = pl.pallas_call(
        functools.partial(precompute_kernel, scale=1.0 / math.sqrt(H), hp=Hp),
        out_shape=(jax.ShapeDtypeStruct((Hp, Tp), f32),
                   jax.ShapeDtypeStruct((1, Tp), f32),
                   jax.ShapeDtypeStruct((Tp, Lp), f32)),
        grid=(1,),
        in_specs=[
            pl.BlockSpec((Tp, Hp), lambda i: (0, 0)),
            pl.BlockSpec((Hp, 2 * Hp), lambda i: (0, 0)),
            pl.BlockSpec((1, 2 * Hp), lambda i: (0, 0)),
            pl.BlockSpec((Hp, Hp), lambda i: (0, 0)),
            pl.BlockSpec((1, Hp), lambda i: (0, 0)),
            pl.BlockSpec((Hp, Lp), lambda i: (0, 0)),
        ],
        out_specs=(pl.BlockSpec((Hp, Tp), lambda i: (0, 0)),
                   pl.BlockSpec((1, Tp), lambda i: (0, 0)),
                   pl.BlockSpec((Tp, Lp), lambda i: (0, 0))),
    )(ont_p, wkv, bkv, wq, bq, wc)

    # 2) Row-tiled scores -> softmax -> logits over the flattened (B*S) rows.
    x_p = _pad2(x.reshape(rows, H), Rp, Hp).astype(jnp.bfloat16)

    kernel = functools.partial(ner_oa_kernel, t_actual=T, t_padded=Tp)
    flops = 2 * Rp * (Hp * Tp + Tp * Lp)
    bytes_accessed = (Rp * Hp * 2 + Rp * Lp * 4
                      + (Hp * Tp + Tp + Tp * Lp + Lp) * 4)
    # VMEM budget: x tile + logits tile double-buffered, invariant weights
    # single-buffered (with (1, n) rows padded to 8 sublanes), plus headroom.
    vmem_bytes = (2 * rt * Hp * 2 + 2 * rt * Lp * 4
                  + (Hp * Tp + 8 * Tp + Tp * Lp + 8 * Lp) * 4)
    vmem_limit = int(min(max(2 * vmem_bytes + (4 << 20), 16 << 20), 48 << 20))

    def build(invariant_kwargs):
        return pl.pallas_call(
            kernel,
            out_shape=jax.ShapeDtypeStruct((Rp, Lp), jnp.float32),
            grid=(n_tiles,),
            in_specs=[
                pl.BlockSpec((rt, Hp), lambda r: (r, 0)),    # token row tile
                pl.BlockSpec((Hp, Tp), lambda r: (0, 0), **invariant_kwargs),
                pl.BlockSpec((1, Tp), lambda r: (0, 0), **invariant_kwargs),
                pl.BlockSpec((Tp, Lp), lambda r: (0, 0), **invariant_kwargs),
                pl.BlockSpec((1, Lp), lambda r: (0, 0), **invariant_kwargs),
            ],
            out_specs=pl.BlockSpec((rt, Lp), lambda r: (r, 0)),
            compiler_params=pltpu.CompilerParams(
                dimension_semantics=("parallel",),
                vmem_limit_bytes=vmem_limit),
            cost_estimate=pl.CostEstimate(flops=flops,
                                          transcendentals=Rp * Tp,
                                          bytes_accessed=bytes_accessed),
        )

    try:
        # Invariant operands (constant index_map) single-buffered: halves
        # their VMEM footprint and frees room for deeper x pipelining.
        logits_pad = build({"pipeline_mode": pl.Buffered(1)})(
            x_p, a_mat, bs_vec, vp_mat, bc)
    except Exception:
        # Fallback for JAX builds that reject pipeline_mode / Buffered(1)
        # on a top-level pallas_call BlockSpec.
        logits_pad = build({})(x_p, a_mat, bs_vec, vp_mat, bc)

    return logits_pad[:rows, :L].reshape(B, S, L)


# ---------------------------- JAX glue (stand-in) -------------------------- #
def bert_stand_in(input_ids, token_type_ids, emb):
    """Deterministic stand-in for AutoModel(...).last_hidden_state:
    token + position + type embeddings followed by LayerNorm."""
    S = input_ids.shape[-1]
    h = (emb["tok"][input_ids]
         + emb["pos"][jnp.arange(S)][None, :, :]
         + emb["typ"][token_type_ids])
    mu = jnp.mean(h, axis=-1, keepdims=True)
    var = jnp.var(h, axis=-1, keepdims=True)
    h = (h - mu) / jnp.sqrt(var + 1e-12)
    return h * emb["ln_g"] + emb["ln_b"]


def ner_model_oa_forward(input_ids, token_type_ids, attention_mask,
                         ontology_input_ids, ontology_token_type_ids,
                         emb, params):
    # self.bert(input_ids, ...) -> last_hidden_state   (B, S, H)
    x_hidden = bert_stand_in(input_ids, token_type_ids, emb)
    # encode_ontology: identical ontology per batch element -> compute once (T, H)
    ont_hidden = bert_stand_in(ontology_input_ids[None, :],
                               ontology_token_type_ids[None, :], emb)[0]
    # do_attention (cross-attention) + dropout(identity) + classifier -> logits
    logits = cross_att_and_classify(x_hidden, ont_hidden, params)
    loss = None  # labels=None in this example
    return loss, logits


# --------------------------------- main ------------------------------------ #
if __name__ == "__main__":
    B, S, T, H, L, VOCAB = 2, 8, 8, 32, 8, 64

    key = jax.random.PRNGKey(0)
    keys = jax.random.split(key, 12)

    # Deterministic "module" parameters.
    params = {
        "wq": jax.random.normal(keys[0], (H, H), jnp.float32) * 0.05,
        "bq": jnp.zeros((1, H), jnp.float32),
        "wk": jax.random.normal(keys[1], (H, H), jnp.float32) * 0.05,
        "bk": jnp.zeros((1, H), jnp.float32),
        "wv": jax.random.normal(keys[2], (H, H), jnp.float32) * 0.05,
        "bv": jnp.zeros((1, H), jnp.float32),
        "wc": jax.random.normal(keys[3], (H, L), jnp.float32) * 0.05,
        "bc": jnp.zeros((1, L), jnp.float32),
    }
    emb = {
        "tok": jax.random.normal(keys[4], (VOCAB, H), jnp.float32) * 0.1,
        "pos": jax.random.normal(keys[5], (max(S, T), H), jnp.float32) * 0.1,
        "typ": jax.random.normal(keys[6], (2, H), jnp.float32) * 0.1,
        "ln_g": jnp.ones((H,), jnp.float32),
        "ln_b": jnp.zeros((H,), jnp.float32),
    }

    # Deterministic example inputs.
    input_ids = jax.random.randint(keys[7], (B, S), 0, VOCAB)
    token_type_ids = jnp.zeros((B, S), jnp.int32)
    attention_mask = jnp.ones((B, S), jnp.int32)
    ontology_input_ids = jax.random.randint(keys[8], (T,), 0, VOCAB)
    ontology_token_type_ids = jnp.zeros((T,), jnp.int32)

    loss, logits = ner_model_oa_forward(
        input_ids, token_type_ids, attention_mask,
        ontology_input_ids, ontology_token_type_ids, emb, params)
    jax.block_until_ready(logits)

    assert logits.shape == (B, S, L), logits.shape
    assert loss is None
    assert bool(jnp.all(jnp.isfinite(logits)))
    print("KERNEL_OK")
</pallas_src>

<mosaic_0001>
module attributes {stable_mosaic.version = 11 : i64} {
  func.func @precompute_kernel(%arg0: i32, %arg1: memref<128x128xf32, #tpu.memory_space<vmem>>, %arg2: memref<128x256xf32, #tpu.memory_space<vmem>>, %arg3: memref<1x256xf32, #tpu.memory_space<vmem>>, %arg4: memref<128x128xf32, #tpu.memory_space<vmem>>, %arg5: memref<1x128xf32, #tpu.memory_space<vmem>>, %arg6: memref<128x128xf32, #tpu.memory_space<vmem>>, %arg7: memref<128x128xf32, #tpu.memory_space<vmem>>, %arg8: memref<1x128xf32, #tpu.memory_space<vmem>>, %arg9: memref<128x128xf32, #tpu.memory_space<vmem>>) attributes {dimension_semantics = [#tpu.dimension_semantics<arbitrary>], iteration_bounds = array<i64: 1>, scalar_prefetch = 0 : i64, scratch_operands = 0 : i64, tpu.core_type = #tpu.core_type<tc>, window_params = [{pipeline_mode = #tpu.pipeline_mode<synchronous>, transform_indices = @transform_0, window_bounds = array<i64: 128, 128>}, {pipeline_mode = #tpu.pipeline_mode<synchronous>, transform_indices = @transform_1, window_bounds = array<i64: 128, 256>}, {pipeline_mode = #tpu.pipeline_mode<synchronous>, transform_indices = @transform_2, window_bounds = array<i64: 1, 256>}, {pipeline_mode = #tpu.pipeline_mode<synchronous>, transform_indices = @transform_3, window_bounds = array<i64: 128, 128>}, {pipeline_mode = #tpu.pipeline_mode<synchronous>, transform_indices = @transform_4, window_bounds = array<i64: 1, 128>}, {pipeline_mode = #tpu.pipeline_mode<synchronous>, transform_indices = @transform_5, window_bounds = array<i64: 128, 128>}, {pipeline_mode = #tpu.pipeline_mode<synchronous>, transform_indices = @transform_6, window_bounds = array<i64: 128, 128>}, {pipeline_mode = #tpu.pipeline_mode<synchronous>, transform_indices = @transform_7, window_bounds = array<i64: 1, 128>}, {pipeline_mode = #tpu.pipeline_mode<synchronous>, transform_indices = @transform_8, window_bounds = array<i64: 128, 128>}]} {
    %c0 = arith.constant 0 : index
    %c0_0 = arith.constant 0 : index
    %0 = vector.load %arg1[%c0, %c0_0] : memref<128x128xf32, #tpu.memory_space<vmem>>, vector<128x128xf32>
    %c0_1 = arith.constant 0 : index
    %c0_2 = arith.constant 0 : index
    %1 = vector.load %arg2[%c0_1, %c0_2] : memref<128x256xf32, #tpu.memory_space<vmem>>, vector<128x256xf32>
    %cst = arith.constant dense<0.000000e+00> : vector<128x256xf32>
    %2 = tpu.matmul %0, %1, %cst {dimension_numbers = #tpu.dot_dimension_numbers<[1], [0], [0], [1], [0, 0, 1, 1], [], []>} : vector<128x128xf32>, vector<128x256xf32>, vector<128x256xf32> -> vector<128x256xf32>
    %c0_3 = arith.constant 0 : index
    %c0_4 = arith.constant 0 : index
    %3 = vector.load %arg3[%c0_3, %c0_4] : memref<1x256xf32, #tpu.memory_space<vmem>>, vector<1x256xf32>
    %4 = vector.broadcast %3 : vector<1x256xf32> to vector<128x256xf32>
    %5 = arith.addf %2, %4 : vector<128x256xf32>
    %6 = vector.extract_strided_slice %5 {offsets = [0, 0], sizes = [128, 128], strides = [1, 1]} : vector<128x256xf32> to vector<128x128xf32>
    %7 = vector.extract_strided_slice %5 {offsets = [0, 128], sizes = [128, 128], strides = [1, 1]} : vector<128x256xf32> to vector<128x128xf32>
    %c0_5 = arith.constant 0 : index
    %c0_6 = arith.constant 0 : index
    %8 = vector.load %arg4[%c0_5, %c0_6] : memref<128x128xf32, #tpu.memory_space<vmem>>, vector<128x128xf32>
    %cst_7 = arith.constant dense<0.000000e+00> : vector<128x128xf32>
    %9 = tpu.matmul %8, %6, %cst_7 {dimension_numbers = #tpu.dot_dimension_numbers<[1], [1], [0], [0], [0, 0, 1, 0], [], []>} : vector<128x128xf32>, vector<128x128xf32>, vector<128x128xf32> -> vector<128x128xf32>
    %cst_8 = arith.constant 0.176776692 : f32
    %10 = vector.broadcast %cst_8 : f32 to vector<128x128xf32>
    %11 = arith.mulf %10, %9 : vector<128x128xf32>
    %c0_9 = arith.constant 0 : index
    %c0_10 = arith.constant 0 : index
    %12 = vector.load %arg7[%c0_9, %c0_10] : memref<128x128xf32, #tpu.memory_space<vmem>>, vector<128x128xf32>
    tpu.vector_store %arg7[%c0_9, %c0_10], %11 {strides = array<i32>} : memref<128x128xf32, #tpu.memory_space<vmem>>, vector<128x128xf32>,
    %c0_11 = arith.constant 0 : index
    %c0_12 = arith.constant 0 : index
    %13 = vector.load %arg5[%c0_11, %c0_12] : memref<1x128xf32, #tpu.memory_space<vmem>>, vector<1x128xf32>
    %cst_13 = arith.constant dense<0.000000e+00> : vector<1x128xf32>
    %14 = tpu.matmul %13, %6, %cst_13 {dimension_numbers = #tpu.dot_dimension_numbers<[1], [1], [0], [0], [0, 0, 1, 0], [], []>} : vector<1x128xf32>, vector<128x128xf32>, vector<1x128xf32> -> vector<1x128xf32>
    %cst_14 = arith.constant 0.176776692 : f32
    %15 = vector.broadcast %cst_14 : f32 to vector<1x128xf32>
    %16 = arith.mulf %15, %14 : vector<1x128xf32>
    %c0_15 = arith.constant 0 : index
    %c0_16 = arith.constant 0 : index
    %17 = vector.load %arg8[%c0_15, %c0_16] : memref<1x128xf32, #tpu.memory_space<vmem>>, vector<1x128xf32>
    tpu.vector_store %arg8[%c0_15, %c0_16], %16 {strides = array<i32>} : memref<1x128xf32, #tpu.memory_space<vmem>>, vector<1x128xf32>,
    %c0_17 = arith.constant 0 : index
    %c0_18 = arith.constant 0 : index
    %18 = vector.load %arg6[%c0_17, %c0_18] : memref<128x128xf32, #tpu.memory_space<vmem>>, vector<128x128xf32>
    %cst_19 = arith.constant dense<0.000000e+00> : vector<128x128xf32>
    %19 = tpu.matmul %7, %18, %cst_19 {dimension_numbers = #tpu.dot_dimension_numbers<[1], [0], [0], [1], [0, 0, 1, 1], [], []>} : vector<128x128xf32>, vector<128x128xf32>, vector<128x128xf32> -> vector<128x128xf32>
    %c0_20 = arith.constant 0 : index
    %c0_21 = arith.constant 0 : index
    %20 = vector.load %arg9[%c0_20, %c0_21] : memref<128x128xf32, #tpu.memory_space<vmem>>, vector<128x128xf32>
    tpu.vector_store %arg9[%c0_20, %c0_21], %19 {strides = array<i32>} : memref<128x128xf32, #tpu.memory_space<vmem>>, vector<128x128xf32>,
    return
  }
  func.func @transform_0(%arg0: i32) -> (i32, i32) {
    %c0_i32 = arith.constant 0 : i32
    %c0_i32_0 = arith.constant 0 : i32
    %c0_i32_1 = arith.constant 0 : i32
    return %c0_i32, %c0_i32_0 : i32, i32
  }
  func.func @transform_1(%arg0: i32) -> (i32, i32) {
    %c0_i32 = arith.constant 0 : i32
    %c0_i32_0 = arith.constant 0 : i32
    %c0_i32_1 = arith.constant 0 : i32
    return %c0_i32, %c0_i32_0 : i32, i32
  }
  func.func @transform_2(%arg0: i32) -> (i32, i32) {
    %c0_i32 = arith.constant 0 : i32
    %c0_i32_0 = arith.constant 0 : i32
    %c0_i32_1 = arith.constant 0 : i32
    return %c0_i32, %c0_i32_0 : i32, i32
  }
  func.func @transform_3(%arg0: i32) -> (i32, i32) {
    %c0_i32 = arith.constant 0 : i32
    %c0_i32_0 = arith.constant 0 : i32
    %c0_i32_1 = arith.constant 0 : i32
    return %c0_i32, %c0_i32_0 : i32, i32
  }
  func.func @transform_4(%arg0: i32) -> (i32, i32) {
    %c0_i32 = arith.constant 0 : i32
    %c0_i32_0 = arith.constant 0 : i32
    %c0_i32_1 = arith.constant 0 : i32
    return %c0_i32, %c0_i32_0 : i32, i32
  }
  func.func @transform_5(%arg0: i32) -> (i32, i32) {
    %c0_i32 = arith.constant 0 : i32
    %c0_i32_0 = arith.constant 0 : i32
    %c0_i32_1 = arith.constant 0 : i32
    return %c0_i32, %c0_i32_0 : i32, i32
  }
  func.func @transform_6(%arg0: i32) -> (i32, i32) {
    %c0_i32 = arith.constant 0 : i32
    %c0_i32_0 = arith.constant 0 : i32
    %c0_i32_1 = arith.constant 0 : i32
    return %c0_i32, %c0_i32_0 : i32, i32
  }
  func.func @transform_7(%arg0: i32) -> (i32, i32) {
    %c0_i32 = arith.constant 0 : i32
    %c0_i32_0 = arith.constant 0 : i32
    %c0_i32_1 = arith.constant 0 : i32
    return %c0_i32, %c0_i32_0 : i32, i32
  }
  func.func @transform_8(%arg0: i32) -> (i32, i32) {
    %c0_i32 = arith.constant 0 : i32
    %c0_i32_0 = arith.constant 0 : i32
    %c0_i32_1 = arith.constant 0 : i32
    return %c0_i32, %c0_i32_0 : i32, i32
  }
}

</mosaic_0001>

<bundles_post_ra>
// kernel: tpu_custom_call.1
= control target key start
LH: loop header
LB: loop body
LE: loop exit
PB: predicated region body
PF: predicated region fallthrough
CT: control target
= control target key end

     0   :  { %14 = vsyncpa [#allocation3], 0  ;;  %s1037_s0 = inlined_call_operand.hbm [shape: f32[128,128], index: 0, kind: input, shape index: {}]   ;;  %s1038_s1 = inlined_call_operand.hbm [shape: f32[128,256], index: 1, kind: input, shape index: {}]   ;;  %s1039_s2 = inlined_call_operand.hbm [shape: f32[1,256], index: 2, kind: input, shape index: {}]   ;;  %s1040_s3 = inlined_call_operand.hbm [shape: f32[128,128], index: 3, kind: input, shape index: {}]   ;;  %s1041_s4 = inlined_call_operand.vmem [shape: f32[1,128], index: 4, kind: input, shape index: {}]   ;;  %s1042_s5 = inlined_call_operand.hbm [shape: f32[128,128], index: 5, kind: input, shape index: {}]   ;;  %s1043_s6 = inlined_call_operand.hbm [shape: f32[128,128], index: 6, kind: output, shape index: {0}]   ;;  %s1044_s7 = inlined_call_operand.hbm [shape: f32[1,128], index: 7, kind: output, shape index: {1}]   ;;  %s1045_s8 = inlined_call_operand.hbm [shape: f32[128,128], index: 8, kind: output, shape index: {2}]  }
   0x1   :  { %15 = vsyncpa [#allocation6], 0 }
   0x2   :  { %16 = vsyncpa [#allocation9], 0 }
   0x3   :  { %17 = vsyncpa [#allocation4], 0  ;;  %s36_s29 = sshll.u32 %s1038_s1, 4  ;;  %s37_s29 = int_to_ptr.hbm [resolvable:$true] %s36_s29 }
   0x4   :  { %18 = vsyncpa [#allocation13], 0  ;;  %s805_s30 = smov [#allocation5]   ;;  %s806_s10 = smov 256  }
   0x5   :  { %s38_s9 = sshll.u32 %s805_s30, 4  ;;  %s807_s11 = smov 16   ;;  %s39_s9 = int_to_ptr.vmem [resolvable:$true] %s38_s9 }
   0x6   :  { %44 = dma.hbm_to_vmem [thread:$0]  %s37_s29, 4096, %s39_s9, [#allocation6], %s806_s10, %s806_s10, %s807_s11  }
   0x7   :  { %s60_s14 = sshll.u32 %s1040_s3, 4  ;;  %s808_s15 = smov [#allocation8]   ;;  %s61_s14 = int_to_ptr.hbm [resolvable:$true] %s60_s14 }
   0x8   :  { %s62_s16 = sshll.u32 %s808_s15, 4  ;;  %s23_s19 = sshll.u32 %s1037_s0, 4  ;;  %s63_s16 = int_to_ptr.vmem [resolvable:$true] %s62_s16  ;;  %s24_s19 = int_to_ptr.hbm [resolvable:$true] %s23_s19 }
   0x9   :  { %s809_s1 = smov 128   ;;  %s810_s20 = smov 8  }
   0xa   :  { %68 = dma.hbm_to_vmem [thread:$0]  %s61_s14, 2048, %s63_s16, [#allocation9], %s809_s1, %s809_s1, %s810_s20  }
   0xb   :  { %s50_s23 = sshll.u32 %s1039_s2, 4  ;;  %s811_s3 = smov [#allocation2]   ;;  %s51_s23 = int_to_ptr.hbm [resolvable:$true] %s50_s23 }
   0xc   :  { %s25_s24 = sshll.u32 %s811_s3, 4  ;;  %s812_s0 = smov [#allocation7]   ;;  %s26_s24 = int_to_ptr.vmem [resolvable:$true] %s25_s24 }
   0xd   :  { %31 = dma.hbm_to_vmem [thread:$0]  %s24_s19, 2048, %s26_s24, [#allocation3], %s809_s1, %s809_s1, %s810_s20  }
   0xe   :  { %s52_s25 = sshll.u32 %s812_s0, 4  ;;  %s75_s28 = sshll.u32 %s1042_s5, 4  ;;  %s53_s25 = int_to_ptr.vmem [resolvable:$true] %s52_s25  ;;  %s76_s28 = int_to_ptr.hbm [resolvable:$true] %s75_s28 }
   0xf   :  { %55 = dma.hbm_to_vmem [thread:$0]  %s51_s23, 32, %s53_s25, [#allocation6]  }
  0x10   :  { %s813_s29 = smov [#allocation10]  }
  0x11   :  { %s77_s30 = sshll.u32 %s813_s29, 4  ;;  %s78_s30 = int_to_ptr.vmem [resolvable:$true] %s77_s30 }
  0x12   :  { %83 = dma.hbm_to_vmem [thread:$0]  %s76_s28, 2048, %s78_s30, [#allocation9], %s809_s1, %s809_s1, %s810_s20  }
  0x13   :  { %795 = dma.done.wait [#allocation3], 2048  }
  0x14   :  { %796 = vsyncadd [#allocation3], 4294965248 }
  0x15   :  { %797 = dma.done.wait [#allocation6], 4128  }
  0x16   :  { %798 = vsyncadd [#allocation6], 4294963168 }
  0x17   :  { %799 = dma.done.wait [#allocation9], 4096  }
  0x18   :  { %800 = vsyncadd [#allocation9], 4294963200  ;;  %v150_v0 = vld [vmem:[#allocation5 + $0xf0] sm:$0xff]  ;;  %v148_v1 = vld [vmem:[#allocation5 + $0xe0] sm:$0xff]  ;;  %s541_s12 = sshll.u32 %s1044_s7, 4  ;;  %s815_s13 = smov [#allocation14]   ;;  %s542_s12 = int_to_ptr.hbm [resolvable:$true] %s541_s12 }
  0x19   :  { %158 = vmatpush.msra.mxu0 %v150_v0  ;;  %v146_v2 = vld [vmem:[#allocation5 + $0xd0] sm:$0xff]  ;;  %v144_v3 = vld [vmem:[#allocation5 + $0xc0] sm:$0xff]  ;;  %v889_v17 = vld [vmem:[#allocation2 + $0x8] sm:$0xff]  ;;  %s549_s14 = sshll.u32 %s815_s13, 4  ;;  %s551_s17 = sshll.u32 %s1045_s8, 4  ;;  %s550_s14 = int_to_ptr.vmem [resolvable:$true] %s549_s14  ;;  %s552_s17 = int_to_ptr.hbm [resolvable:$true] %s551_s17 }
  0x1a   :  { %v142_v4 = vld [vmem:[#allocation5 + $0xb0] sm:$0xff]  ;;  %v140_v5 = vld [vmem:[#allocation5 + $0xa0] sm:$0xff]  ;;  %v895_v19 = vld [vmem:[#allocation2 + $0x18] sm:$0xff]  ;;  %s816_s7 = smov [#allocation11]   ;;  %s527_s21 = sshll.u32 %s1043_s6, 4  ;;  %s528_s21 = int_to_ptr.hbm [resolvable:$true] %s527_s21 }
  0x1b   :  { %159 = vmatpush.msra.mxu0 %v148_v1  ;;  %v138_v6 = vld [vmem:[#allocation5 + $0x90] sm:$0xff]  ;;  %v136_v7 = vld [vmem:[#allocation5 + $0x80] sm:$0xff]  ;;  %v901_v21 = vld [vmem:[#allocation2 + $0x28] sm:$0xff]  ;;  %s525_s8 = sshll.u32 %s816_s7, 4  ;;  %s526_s8 = int_to_ptr.vmem [resolvable:$true] %s525_s8 }
  0x1c   :  { %v134_v8 = vld [vmem:[#allocation5 + $0x70] sm:$0xff]  ;;  %v132_v9 = vld [vmem:[#allocation5 + $0x60] sm:$0xff]  ;;  %v907_v23 = vld [vmem:[#allocation2 + $0x38] sm:$0xff] }
  0x1d   :  { %160 = vmatpush.msra.mxu0 %v146_v2  ;;  %v130_v10 = vld [vmem:[#allocation5 + $0x50] sm:$0xff]  ;;  %v128_v11 = vld [vmem:[#allocation5 + $0x40] sm:$0xff]  ;;  %v913_v25 = vld [vmem:[#allocation2 + $0x48] sm:$0xff] }
  0x1e   :  { %v126_v12 = vld [vmem:[#allocation5 + $0x30] sm:$0xff]  ;;  %v124_v13 = vld [vmem:[#allocation5 + $0x20] sm:$0xff]  ;;  %v919_v27 = vld [vmem:[#allocation2 + $0x58] sm:$0xff] }
  0x1f   :  { %161 = vmatpush.msra.mxu0 %v144_v3  ;;  %v122_v14 = vld [vmem:[#allocation5 + $0x10] sm:$0xff]  ;;  %v120_v15 = vld [vmem:[#allocation5] sm:$0xff]  ;;  %v925_v29 = vld [vmem:[#allocation2 + $0x68] sm:$0xff] }
  0x20   :  { %v886_v16 = vld [vmem:[#allocation2] sm:$0xff]  ;;  %v892_v18 = vld [vmem:[#allocation2 + $0x10] sm:$0xff]  ;;  %v151_v30 = vld [vmem:[#allocation5 + $0xf8] sm:$0xff] }
  0x21   :  { %162 = vmatpush.msra.mxu0 %v142_v4  ;;  %v898_v20 = vld [vmem:[#allocation2 + $0x20] sm:$0xff]  ;;  %v904_v22 = vld [vmem:[#allocation2 + $0x30] sm:$0xff]  ;;  %v149_v31 = vld [vmem:[#allocation5 + $0xe8] sm:$0xff]  ;;  %223 = vmatpush.msra.mxu1 %v151_v30 }
  0x22   :  { %v910_v24 = vld [vmem:[#allocation2 + $0x40] sm:$0xff]  ;;  %v916_v26 = vld [vmem:[#allocation2 + $0x50] sm:$0xff]  ;;  %v147_v33 = vld [vmem:[#allocation5 + $0xd8] sm:$0xff] }
  0x23   :  { %163 = vmatpush.msra.mxu0 %v140_v5  ;;  %v922_v28 = vld [vmem:[#allocation2 + $0x60] sm:$0xff]  ;;  %224 = vmatpush.msra.mxu1 %v149_v31  ;;  %v928_v32 = vld [vmem:[#allocation2 + $0x70] sm:$0xff]  ;;  %v145_v34 = vld [vmem:[#allocation5 + $0xc8] sm:$0xff] }
  0x24   :  { %v143_v35 = vld [vmem:[#allocation5 + $0xb8] sm:$0xff]  ;;  %v141_v36 = vld [vmem:[#allocation5 + $0xa8] sm:$0xff]  ;;  %v152_v3 = vld [vmem:[#allocation7] sm:$0x3] }
  0x25   :  { %164 = vmatpush.msra.mxu0 %v138_v6  ;;  %225 = vmatpush.msra.mxu1 %v147_v33  ;;  %v931_v37 = vld [vmem:[#allocation2 + $0x78] sm:$0xff]  ;;  %v137_v39 = vld [vmem:[#allocation5 + $0x88] sm:$0xff]  ;;  %v970_v5 = vperm.slane %v152_v3, 0 }
  0x26   :  { %v139_v38 = vld [vmem:[#allocation5 + $0x98] sm:$0xff]  ;;  %v133_v41 = vld [vmem:[#allocation5 + $0x68] sm:$0xff] }
  0x27   :  { %165 = vmatpush.msra.mxu0 %v136_v7  ;;  %226 = vmatpush.msra.mxu1 %v145_v34  ;;  %v135_v40 = vld [vmem:[#allocation5 + $0x78] sm:$0xff]  ;;  %v129_v44 = vld [vmem:[#allocation5 + $0x48] sm:$0xff] }
  0x28   :  { %v131_v43 = vld [vmem:[#allocation5 + $0x58] sm:$0xff]  ;;  %v125_v46 = vld [vmem:[#allocation5 + $0x28] sm:$0xff] }
  0x29   :  { %166 = vmatpush.msra.mxu0 %v134_v8  ;;  %227 = vmatpush.msra.mxu1 %v143_v35  ;;  %v127_v45 = vld [vmem:[#allocation5 + $0x38] sm:$0xff]  ;;  %v121_v49 = vld [vmem:[#allocation5 + $0x8] sm:$0xff] }
  0x2a   :  { %v123_v48 = vld [vmem:[#allocation5 + $0x18] sm:$0xff]  ;;  %v437_v1 = vld [vmem:[#allocation10 + $0x68] sm:$0xff]  ;;  %v436_v2 = vld [vmem:[#allocation10 + $0x60] sm:$0xff] }
  0x2b   :  { %167 = vmatpush.msra.mxu0 %v132_v9  ;;  %228 = vmatpush.msra.mxu1 %v141_v36  ;;  %v439_v62 = vld [vmem:[#allocation10 + $0x78] sm:$0xff]  ;;  %v438_v63 = vld [vmem:[#allocation10 + $0x70] sm:$0xff]  ;;  %v433_v8 = vld [vmem:[#allocation10 + $0x48] sm:$0xff] }
  0x2c   :  { %440 = vmatpush.msra.mxu3 %v439_v62  ;;  %v435_v4 = vld [vmem:[#allocation10 + $0x58] sm:$0xff]  ;;  %v434_v6 = vld [vmem:[#allocation10 + $0x50] sm:$0xff] }
  0x2d   :  { %168 = vmatpush.msra.mxu0 %v130_v10  ;;  %229 = vmatpush.msra.mxu1 %v139_v38  ;;  %v432_v10 = vld [vmem:[#allocation10 + $0x40] sm:$0xff]  ;;  %v295_v62 = vld [vmem:[#allocation8 + $0x38] sm:$0xff] }
  0x2e   :  { %441 = vmatpush.msra.mxu3 %v438_v63 }
  0x2f   :  { %169 = vmatpush.msra.mxu0 %v128_v11  ;;  %230 = vmatpush.msra.mxu1 %v137_v39  ;;  %v431_v11 = vld [vmem:[#allocation10 + $0x38] sm:$0xff] }
  0x30   :  { %442 = vmatpush.msra.mxu3 %v437_v1  ;;  %v296_v1 = vld [vmem:[#allocation8 + $0x40] sm:$0xff] }
  0x31   :  { %170 = vmatpush.msra.mxu0 %v126_v12  ;;  %231 = vmatpush.msra.mxu1 %v135_v40 }
  0x32   :  { %443 = vmatpush.msra.mxu3 %v436_v2 }
  0x33   :  { %171 = vmatpush.msra.mxu0 %v124_v13  ;;  %232 = vmatpush.msra.mxu1 %v133_v41  ;;  %v430_v13 = vld [vmem:[#allocation10 + $0x30] sm:$0xff] }
  0x34   :  { %444 = vmatpush.msra.mxu3 %v435_v4  ;;  %v297_v4 = vld [vmem:[#allocation8 + $0x48] sm:$0xff] }
  0x35   :  { %172 = vmatpush.msra.mxu0 %v122_v14  ;;  %233 = vmatpush.msra.mxu1 %v131_v43  ;;  %v429_v14 = vld [vmem:[#allocation10 + $0x28] sm:$0xff] }
  0x36   :  { %445 = vmatpush.msra.mxu3 %v434_v6 }
  0x37   :  { %173 = vmatpush.msra.mxu0 %v120_v15  ;;  %234 = vmatpush.msra.mxu1 %v129_v44 }
  0x38   :  { %174 = vmatmul.f32.vlgmr.msra.gmra.mxu0 %v886_v16  ;;  %446 = vmatpush.msra.mxu3 %v433_v8 }
  0x39   :  { %235 = vmatpush.msra.mxu1 %v127_v45 }
  0x3a   :  { %447 = vmatpush.msra.mxu3 %v432_v10 }
  0x3b   :  { %236 = vmatpush.msra.mxu1 %v125_v46 }
  0x3c   :  { %448 = vmatpush.msra.mxu3 %v431_v11  ;;  %v299_v11 = vld [vmem:[#allocation8 + $0x58] sm:$0xff] }
  0x3d   :  { %237 = vmatpush.msra.mxu1 %v123_v48 }
  0x3e   :  { %449 = vmatpush.msra.mxu3 %v430_v13  ;;  %v401_v13 = vld [vmem:[%s1041_s4] sm:$0x1]  ;;  %s814_s4 = smov [#allocation12]  }
  0x3f   :  { %238 = vmatpush.msra.mxu1 %v121_v49  ;;  %v290_v49 = vld [vmem:[#allocation8 + $0x10] sm:$0xff]  ;;  %s539_s9 = sshll.u32 %s814_s4, 4  ;;  %s540_s9 = int_to_ptr.vmem [resolvable:$true] %s539_s9 }
  0x40   :  { %177 = vmatmul.f32.gmra.mxu0 %v889_v17  ;;  %239 = vmatmul.f32.vlgmr.msra.gmra.mxu1 %v886_v16  ;;  %v428_v16 = vld [vmem:[#allocation10 + $0x20] sm:$0xff] }
  0x41   :  { %450 = vmatpush.msra.mxu3 %v429_v14  ;;  %v289_v14 = vld [vmem:[#allocation8 + $0x8] sm:$0xff] }
  0x43   :  { %451 = vmatpush.msra.mxu3 %v428_v16  ;;  %v300_v16 = vld [vmem:[#allocation8 + $0x60] sm:$0xff] }
  0x48   :  { %180 = vmatmul.f32.gmra.mxu0 %v892_v18  ;;  %242 = vmatmul.f32.gmra.mxu1 %v889_v17  ;;  %v427_v17 = vld [vmem:[#allocation10 + $0x18] sm:$0xff] }
  0x49   :  { %452 = vmatpush.msra.mxu3 %v427_v17  ;;  %v301_v17 = vld [vmem:[#allocation8 + $0x68] sm:$0xff] }
  0x50   :  { %183 = vmatmul.f32.gmra.mxu0 %v895_v19  ;;  %245 = vmatmul.f32.gmra.mxu1 %v892_v18 }
  0x58   :  { %186 = vmatmul.f32.gmra.mxu0 %v898_v20  ;;  %248 = vmatmul.f32.gmra.mxu1 %v895_v19  ;;  %v426_v19 = vld [vmem:[#allocation10 + $0x10] sm:$0xff] }
  0x59   :  { %453 = vmatpush.msra.mxu3 %v426_v19  ;;  %v302_v19 = vld [vmem:[#allocation8 + $0x70] sm:$0xff] }
  0x60   :  { %189 = vmatmul.f32.gmra.mxu0 %v901_v21  ;;  %251 = vmatmul.f32.gmra.mxu1 %v898_v20  ;;  %v978_v20 = vperm.slane %v152_v3, 1 }
  0x68   :  { %192 = vmatmul.f32.gmra.mxu0 %v904_v22  ;;  %254 = vmatmul.f32.gmra.mxu1 %v901_v21  ;;  %v425_v21 = vld [vmem:[#allocation10 + $0x8] sm:$0xff] }
  0x69   :  { %454 = vmatpush.msra.mxu3 %v425_v21 }
  0x70   :  { %195 = vmatmul.f32.gmra.mxu0 %v907_v23  ;;  %257 = vmatmul.f32.gmra.mxu1 %v904_v22 }
  0x78   :  { %198 = vmatmul.f32.gmra.mxu0 %v910_v24  ;;  %260 = vmatmul.f32.gmra.mxu1 %v907_v23 }
  0x80   :  { %201 = vmatmul.f32.gmra.mxu0 %v913_v25  ;;  %263 = vmatmul.f32.gmra.mxu1 %v910_v24 }
  0x88   :  { %204 = vmatmul.f32.gmra.mxu0 %v916_v26  ;;  %266 = vmatmul.f32.gmra.mxu1 %v913_v25  ;;  %v424_v25 = vld [vmem:[#allocation10] sm:$0xff] }
  0x89   :  { %455 = vmatpush.msra.mxu3 %v424_v25 }
  0x90   :  { %207 = vmatmul.f32.gmra.mxu0 %v919_v27  ;;  %269 = vmatmul.f32.gmra.mxu1 %v916_v26 }
  0x98   :  { %210 = vmatmul.f32.gmra.mxu0 %v922_v28  ;;  %272 = vmatmul.f32.gmra.mxu1 %v919_v27 }
  0xa0   :  { %213 = vmatmul.f32.gmra.mxu0 %v925_v29  ;;  %275 = vmatmul.f32.gmra.mxu1 %v922_v28 }
  0xa8   :  { %216 = vmatmul.f32.gmra.mxu0 %v928_v32  ;;  %278 = vmatmul.f32.gmra.mxu1 %v925_v29 }
  0xb0   :  { %219 = vmatmul.f32.gmra.mxu0 %v931_v37  ;;  %281 = vmatmul.f32.gmra.mxu1 %v928_v32 }
  0xb5   :  { %v934_v42 = vpop.f32.mrf.mxu0 }
  0xb6   :  { %v176_v48 = vadd.f32 %v934_v42, %v970_v5 }
  0xb8   :  { %284 = vmatmul.f32.gmra.mxu1 %v931_v37 }
  0xbd   :  { %v936_v47 = vpop.f32.mrf.mxu0  ;;  %v240_v23 = vpop.f32.mrf.mxu1 }
  0xbe   :  { %v241_v24 = vadd.f32 %v240_v23, %v978_v20  ;;  %v179_v44 = vadd.f32 %v936_v47, %v970_v5  ;;  %v291_v47 = vld [vmem:[#allocation8 + $0x18] sm:$0xff] }
  0xc0   :  { %456 = vmatmul.f32.vlgmr.msra.gmra.mxu3 %v241_v24 }
  0xc5   :  { %v939_v50 = vpop.f32.mrf.mxu0  ;;  %v243_v28 = vpop.f32.mrf.mxu1 }
  0xc6   :  { %v244_v29 = vadd.f32 %v243_v28, %v978_v20  ;;  %v182_v43 = vadd.f32 %v939_v50, %v970_v5 }
  0xc8   :  { %459 = vmatmul.f32.gmra.mxu3 %v244_v29 }
  0xcd   :  { %v942_v51 = vpop.f32.mrf.mxu0  ;;  %v246_v32 = vpop.f32.mrf.mxu1 }
  0xce   :  { %v247_v33 = vadd.f32 %v246_v32, %v978_v20  ;;  %v185_v39 = vadd.f32 %v942_v51, %v970_v5 }
  0xd0   :  { %462 = vmatmul.f32.gmra.mxu3 %v247_v33 }
  0xd5   :  { %v945_v52 = vpop.f32.mrf.mxu0  ;;  %v249_v36 = vpop.f32.mrf.mxu1 }
  0xd6   :  { %v250_v37 = vadd.f32 %v249_v36, %v978_v20  ;;  %v188_v38 = vadd.f32 %v945_v52, %v970_v5 }
  0xd8   :  { %465 = vmatmul.f32.gmra.mxu3 %v250_v37 }
  0xdd   :  { %v948_v53 = vpop.f32.mrf.mxu0  ;;  %v252_v40 = vpop.f32.mrf.mxu1 }
  0xde   :  { %v191_v35 = vadd.f32 %v948_v53, %v970_v5  ;;  %v253_v41 = vadd.f32 %v252_v40, %v978_v20 }
  0xe0   :  { %468 = vmatmul.f32.gmra.mxu3 %v253_v41 }
  0xe5   :  { %v951_v54 = vpop.f32.mrf.mxu0  ;;  %v255_v45 = vpop.f32.mrf.mxu1 }
  0xe6   :  { %v194_v34 = vadd.f32 %v951_v54, %v970_v5  ;;  %v256_v46 = vadd.f32 %v255_v45, %v978_v20  ;;  %v292_v54 = vld [vmem:[#allocation8 + $0x20] sm:$0xff] }
  0xe8   :  { %471 = vmatmul.f32.gmra.mxu3 %v256_v46 }
  0xed   :  { %v954_v55 = vpop.f32.mrf.mxu0  ;;  %v258_v50 = vpop.f32.mrf.mxu1 }
  0xee   :  { %v197_v31 = vadd.f32 %v954_v55, %v970_v5  ;;  %v259_v51 = vadd.f32 %v258_v50, %v978_v20 }
  0xf0   :  { %474 = vmatmul.f32.gmra.mxu3 %v259_v51 }
  0xf5   :  { %v957_v56 = vpop.f32.mrf.mxu0  ;;  %v261_v52 = vpop.f32.mrf.mxu1 }
  0xf6   :  { %v200_v30 = vadd.f32 %v957_v56, %v970_v5  ;;  %v262_v53 = vadd.f32 %v261_v52, %v978_v20  ;;  %v293_v56 = vld [vmem:[#allocation8 + $0x28] sm:$0xff] }
  0xf8   :  { %477 = vmatmul.f32.gmra.mxu3 %v262_v53 }
  0xfd   :  { %v960_v57 = vpop.f32.mrf.mxu0  ;;  %v264_v55 = vpop.f32.mrf.mxu1 }
  0xfe   :  { %v203_v27 = vadd.f32 %v960_v57, %v970_v5  ;;  %v265_v42 = vadd.f32 %v264_v55, %v978_v20 }
 0x100   :  { %480 = vmatmul.f32.gmra.mxu3 %v265_v42 }
 0x105   :  { %v963_v58 = vpop.f32.mrf.mxu0  ;;  %v267_v57 = vpop.f32.mrf.mxu1 }
 0x106   :  { %v206_v26 = vadd.f32 %v963_v58, %v970_v5  ;;  %v268_v58 = vadd.f32 %v267_v57, %v978_v20 }
 0x108   :  { %483 = vmatmul.f32.gmra.mxu3 %v268_v58 }
 0x10d   :  { %v208_v59 = vpop.f32.mrf.mxu0 }
 0x10e   :  { %v209_v22 = vadd.f32 %v208_v59, %v970_v5  ;;  %v294_v59 = vld [vmem:[#allocation8 + $0x30] sm:$0xff] }
 0x115   :  { %v211_v60 = vpop.f32.mrf.mxu0 }
 0x116   :  { %v212_v18 = vadd.f32 %v211_v60, %v970_v5  ;;  %v270_v60 = vpop.f32.mrf.mxu1 }
 0x11d   :  { %v214_v61 = vpop.f32.mrf.mxu0 }
 0x11e   :  { %v215_v15 = vadd.f32 %v214_v61, %v970_v5  ;;  %v271_v61 = vadd.f32 %v270_v60, %v978_v20  ;;  %v273_v63 = vpop.f32.mrf.mxu1 }
 0x120   :  { %486 = vmatmul.f32.gmra.mxu3 %v271_v61 }
 0x125   :  { %v217_v0 = vpop.f32.mrf.mxu0 }
 0x126   :  { %v218_v12 = vadd.f32 %v217_v0, %v970_v5  ;;  %v274_v0 = vadd.f32 %v273_v63, %v978_v20  ;;  %v276_v2 = vpop.f32.mrf.mxu1 }
 0x127   :  { %v277_v3 = vadd.f32 %v276_v2, %v978_v20 }
 0x128   :  { %489 = vmatmul.f32.gmra.mxu3 %v274_v0 }
 0x12d   :  { %v220_v7 = vpop.f32.mrf.mxu0 }
 0x12e   :  { %v221_v9 = vadd.f32 %v220_v7, %v970_v5  ;;  %v279_v5 = vpop.f32.mrf.mxu1  ;;  %v298_v7 = vld [vmem:[#allocation8 + $0x50] sm:$0xff] }
 0x12f   :  { %v280_v6 = vadd.f32 %v279_v5, %v978_v20 }
 0x130   :  { %304 = vmatpush.xpose.msrb.mxu1 %v221_v9  ;;  %575 = vmatpush.xpose.msra.mxu2 %v221_v9 }
 0x131   :  { %402 = vmatpush.xpose.msrb.mxu0 %v221_v9  ;;  %492 = vmatmul.f32.gmra.mxu3 %v277_v3  ;;  %v288_v9 = vld [vmem:[#allocation8] sm:$0xff] }
 0x134   :  { %305 = vmatpush.xpose.msrb.mxu1 %v218_v12  ;;  %576 = vmatpush.xpose.msra.mxu2 %v218_v12 }
 0x135   :  { %403 = vmatpush.xpose.msrb.mxu0 %v218_v12 }
 0x136   :  { %v282_v8 = vpop.f32.mrf.mxu1 }
 0x137   :  { %v283_v10 = vadd.f32 %v282_v8, %v978_v20 }
 0x138   :  { %306 = vmatpush.xpose.msrb.mxu1 %v215_v15  ;;  %577 = vmatpush.xpose.msra.mxu2 %v215_v15 }
 0x139   :  { %404 = vmatpush.xpose.msrb.mxu0 %v215_v15  ;;  %495 = vmatmul.f32.gmra.mxu3 %v280_v6 }
 0x13c   :  { %307 = vmatpush.xpose.msrb.mxu1 %v212_v18  ;;  %578 = vmatpush.xpose.msra.mxu2 %v212_v18 }
 0x13d   :  { %405 = vmatpush.xpose.msrb.mxu0 %v212_v18 }
 0x13e   :  { %v285_v12 = vpop.f32.mrf.mxu1 }
 0x13f   :  { %v286_v15 = vadd.f32 %v285_v12, %v978_v20 }
 0x140   :  { %308 = vmatpush.xpose.msrb.mxu1 %v209_v22  ;;  %579 = vmatpush.xpose.msra.mxu2 %v209_v22 }
 0x141   :  { %406 = vmatpush.xpose.msrb.mxu0 %v209_v22  ;;  %498 = vmatmul.f32.gmra.mxu3 %v283_v10  ;;  %v303_v22 = vld [vmem:[#allocation8 + $0x78] sm:$0xff] }
 0x143   :  { %v457_v18 = vpop.f32.mrf.mxu3 }
 0x144   :  { %309 = vmatpush.xpose.msrb.mxu1 %v206_v26  ;;  %580 = vmatpush.xpose.msra.mxu2 %v206_v26  ;;  %505 = vst [vmem:[#allocation14] sm:$0xff] %v457_v18 }
 0x145   :  { %407 = vmatpush.xpose.msrb.mxu0 %v206_v26 }
 0x148   :  { %310 = vmatpush.xpose.msrb.mxu1 %v203_v27  ;;  %581 = vmatpush.xpose.msra.mxu2 %v203_v27 }
 0x149   :  { %408 = vmatpush.xpose.msrb.mxu0 %v203_v27  ;;  %501 = vmatmul.f32.gmra.mxu3 %v286_v15 }
 0x14b   :  { %v460_v21 = vpop.f32.mrf.mxu3 }
 0x14c   :  { %311 = vmatpush.xpose.msrb.mxu1 %v200_v30  ;;  %582 = vmatpush.xpose.msra.mxu2 %v200_v30  ;;  %506 = vst [vmem:[#allocation14 + $0x8] sm:$0xff] %v460_v21 }
 0x14d   :  { %409 = vmatpush.xpose.msrb.mxu0 %v200_v30 }
 0x150   :  { %312 = vmatpush.xpose.msrb.mxu1 %v197_v31  ;;  %583 = vmatpush.xpose.msra.mxu2 %v197_v31 }
 0x151   :  { %410 = vmatpush.xpose.msrb.mxu0 %v197_v31 }
 0x153   :  { %v463_v23 = vpop.f32.mrf.mxu3 }
 0x154   :  { %313 = vmatpush.xpose.msrb.mxu1 %v194_v34  ;;  %584 = vmatpush.xpose.msra.mxu2 %v194_v34  ;;  %507 = vst [vmem:[#allocation14 + $0x10] sm:$0xff] %v463_v23 }
 0x155   :  { %411 = vmatpush.xpose.msrb.mxu0 %v194_v34 }
 0x158   :  { %314 = vmatpush.xpose.msrb.mxu1 %v191_v35  ;;  %585 = vmatpush.xpose.msra.mxu2 %v191_v35 }
 0x159   :  { %412 = vmatpush.xpose.msrb.mxu0 %v191_v35 }
 0x15b   :  { %v466_v24 = vpop.f32.mrf.mxu3 }
 0x15c   :  { %315 = vmatpush.xpose.msrb.mxu1 %v188_v38  ;;  %586 = vmatpush.xpose.msra.mxu2 %v188_v38  ;;  %508 = vst [vmem:[#allocation14 + $0x18] sm:$0xff] %v466_v24 }
 0x15d   :  { %413 = vmatpush.xpose.msrb.mxu0 %v188_v38 }
 0x160   :  { %316 = vmatpush.xpose.msrb.mxu1 %v185_v39  ;;  %587 = vmatpush.xpose.msra.mxu2 %v185_v39 }
 0x161   :  { %414 = vmatpush.xpose.msrb.mxu0 %v185_v39 }
 0x163   :  { %v469_v20 = vpop.f32.mrf.mxu3 }
 0x164   :  { %317 = vmatpush.xpose.msrb.mxu1 %v182_v43  ;;  %588 = vmatpush.xpose.msra.mxu2 %v182_v43  ;;  %509 = vst [vmem:[#allocation14 + $0x20] sm:$0xff] %v469_v20 }
 0x165   :  { %415 = vmatpush.xpose.msrb.mxu0 %v182_v43 }
 0x168   :  { %318 = vmatpush.xpose.msrb.mxu1 %v179_v44  ;;  %589 = vmatpush.xpose.msra.mxu2 %v179_v44 }
 0x169   :  { %416 = vmatpush.xpose.msrb.mxu0 %v179_v44 }
 0x16b   :  { %v472_v25 = vpop.f32.mrf.mxu3 }
 0x16c   :  { %319 = vmatpush.xpose.msrb.mxu1 %v176_v48  ;;  %590 = vmatpush.xpose.msra.mxu2 %v176_v48  ;;  %510 = vst [vmem:[#allocation14 + $0x28] sm:$0xff] %v472_v25 }
 0x16d   :  { %417 = vmatpush.xpose.msrb.mxu0 %v176_v48 }
 0x16f   :  { %326 = vmatmul.f32.vlgmr.msra.gmra.mxu2 %v290_v49  ;;  %320 = vmatmul.f32.vlgmr.msrb.gmra.mxu1 %v288_v9 }
 0x170   :  { %418 = vmatmul.f32.vlgmr.msrb.gmra.mxu0 %v401_v13 }
 0x173   :  { %v475_v28 = vpop.f32.mrf.mxu3 }
 0x174   :  { %511 = vst [vmem:[#allocation14 + $0x30] sm:$0xff] %v475_v28 }
 0x177   :  { %329 = vmatmul.f32.gmra.mxu2 %v291_v47  ;;  %323 = vmatmul.f32.gmra.mxu1 %v289_v14 }
 0x17b   :  { %v478_v31 = vpop.f32.mrf.mxu3 }
 0x17c   :  { %512 = vst [vmem:[#allocation14 + $0x38] sm:$0xff] %v478_v31 }
 0x17f   :  { %332 = vmatmul.f32.gmra.mxu2 %v292_v54 }
 0x183   :  { %v481_v34 = vpop.f32.mrf.mxu3 }
 0x184   :  { %513 = vst [vmem:[#allocation14 + $0x40] sm:$0xff] %v481_v34 }
 0x187   :  { %335 = vmatmul.f32.gmra.mxu2 %v293_v56 }
 0x18b   :  { %v484_v37 = vpop.f32.mrf.mxu3 }
 0x18c   :  { %514 = vst [vmem:[#allocation14 + $0x48] sm:$0xff] %v484_v37 }
 0x18f   :  { %338 = vmatmul.f32.gmra.mxu2 %v294_v59 }
 0x197   :  { %341 = vmatmul.f32.gmra.mxu2 %v295_v62 }
 0x19f   :  { %344 = vmatmul.f32.gmra.mxu2 %v296_v1 }
 0x1a3   :  { %v487_v40 = vpop.f32.mrf.mxu3 }
 0x1a4   :  { %515 = vst [vmem:[#allocation14 + $0x50] sm:$0xff] %v487_v40 }
 0x1a7   :  { %347 = vmatmul.f32.gmra.mxu2 %v297_v4 }
 0x1ab   :  { %v490_v44 = vpop.f32.mrf.mxu3 }
 0x1ac   :  { %516 = vst [vmem:[#allocation14 + $0x58] sm:$0xff] %v490_v44 }
 0x1af   :  { %350 = vmatmul.f32.gmra.mxu2 %v298_v7 }
 0x1b4   :  { %v493_v48 = vpop.f32.mrf.mxu3 }
 0x1b5   :  { %517 = vst [vmem:[#allocation14 + $0x60] sm:$0xff] %v493_v48 }
 0x1b7   :  { %353 = vmatmul.f32.gmra.mxu2 %v299_v11 }
 0x1bc   :  { %v496_v51 = vpop.f32.mrf.mxu3 }
 0x1bd   :  { %518 = vst [vmem:[#allocation14 + $0x68] sm:$0xff] %v496_v51 }
 0x1bf   :  { %356 = vmatmul.f32.gmra.mxu2 %v300_v16 }
 0x1c4   :  { %v499_v55 = vpop.f32.mrf.mxu3 }
 0x1c5   :  { %519 = vst [vmem:[#allocation14 + $0x70] sm:$0xff] %v499_v55 }
 0x1c7   :  { %359 = vmatmul.f32.gmra.mxu2 %v301_v17 }
 0x1cc   :  { %v502_v61 = vpop.f32.mrf.mxu3 }
 0x1cd   :  { %520 = vst [vmem:[#allocation14 + $0x78] sm:$0xff] %v502_v61 }
 0x1cf   :  { %362 = vmatmul.f32.gmra.mxu2 %v302_v19 }
 0x1d7   :  { %365 = vmatmul.f32.gmra.mxu2 %v303_v22 }
 0x1ec   :  { %v321_v47 = vpop.f32.mrf.mxu1 }
 0x1ed   :  { %v369_v52 = vmul.f32 0.17677669, %v321_v47  ;;  %v419_v42 = vpop.f32.mrf.mxu0 }
 0x1ee   :  { %v422_v56 = vmul.f32 0.17677669, %v419_v42 }
 0x1ef   :  { %385 = vst [vmem:[#allocation11] sm:$0xff] %v369_v52 }
 0x1f0   :  { %423 = vst [vmem:[#allocation12] sm:$0x1] %v422_v56 }
 0x1f1   :  { %544 = dma.vmem_to_hbm [thread:$0]  %s540_s9, 16, %s542_s12, [#allocation13]  }
 0x1f2   :  { %v327_v26 = vpop.f32.mrf.mxu2  ;;  %557 = dma.vmem_to_hbm [thread:$0]  %s550_s14, 2048, %s552_s17, [#allocation13], %s809_s1, %s809_s1, %s810_s20  }
 0x1f3   :  { %v371_v27 = vmul.f32 0.17677669, %v327_v26 }
 0x1f4   :  { %v324_v57 = vpop.f32.mrf.mxu1 }
 0x1f5   :  { %387 = vst [vmem:[#allocation11 + $0x10] sm:$0xff] %v371_v27  ;;  %v370_v58 = vmul.f32 0.17677669, %v324_v57 }
 0x1f7   :  { %386 = vst [vmem:[#allocation11 + $0x8] sm:$0xff] %v370_v58 }
 0x1fa   :  { %v330_v29 = vpop.f32.mrf.mxu2 }
 0x1fb   :  { %v372_v30 = vmul.f32 0.17677669, %v330_v29 }
 0x1fd   :  { %388 = vst [vmem:[#allocation11 + $0x18] sm:$0xff] %v372_v30 }
 0x202   :  { %v333_v32 = vpop.f32.mrf.mxu2 }
 0x203   :  { %v373_v33 = vmul.f32 0.17677669, %v333_v32 }
 0x205   :  { %389 = vst [vmem:[#allocation11 + $0x20] sm:$0xff] %v373_v33 }
 0x20a   :  { %v336_v35 = vpop.f32.mrf.mxu2 }
 0x20b   :  { %v374_v36 = vmul.f32 0.17677669, %v336_v35 }
 0x20d   :  { %390 = vst [vmem:[#allocation11 + $0x28] sm:$0xff] %v374_v36 }
 0x212   :  { %v339_v38 = vpop.f32.mrf.mxu2 }
 0x213   :  { %v375_v39 = vmul.f32 0.17677669, %v339_v38 }
 0x215   :  { %391 = vst [vmem:[#allocation11 + $0x30] sm:$0xff] %v375_v39 }
 0x21a   :  { %v342_v41 = vpop.f32.mrf.mxu2 }
 0x21b   :  { %v376_v43 = vmul.f32 0.17677669, %v342_v41 }
 0x21d   :  { %392 = vst [vmem:[#allocation11 + $0x38] sm:$0xff] %v376_v43 }
 0x222   :  { %v345_v45 = vpop.f32.mrf.mxu2 }
 0x223   :  { %v377_v46 = vmul.f32 0.17677669, %v345_v45 }
 0x225   :  { %393 = vst [vmem:[#allocation11 + $0x40] sm:$0xff] %v377_v46 }
 0x22a   :  { %v348_v49 = vpop.f32.mrf.mxu2 }
 0x22b   :  { %v378_v50 = vmul.f32 0.17677669, %v348_v49 }
 0x22d   :  { %394 = vst [vmem:[#allocation11 + $0x48] sm:$0xff] %v378_v50 }
 0x232   :  { %v351_v53 = vpop.f32.mrf.mxu2 }
 0x233   :  { %v379_v54 = vmul.f32 0.17677669, %v351_v53 }
 0x235   :  { %395 = vst [vmem:[#allocation11 + $0x50] sm:$0xff] %v379_v54 }
 0x23a   :  { %v354_v59 = vpop.f32.mrf.mxu2 }
 0x23b   :  { %v380_v60 = vmul.f32 0.17677669, %v354_v59 }
 0x23d   :  { %396 = vst [vmem:[#allocation11 + $0x58] sm:$0xff] %v380_v60 }
 0x242   :  { %v357_v62 = vpop.f32.mrf.mxu2 }
 0x243   :  { %v381_v63 = vmul.f32 0.17677669, %v357_v62 }
 0x245   :  { %397 = vst [vmem:[#allocation11 + $0x60] sm:$0xff] %v381_v63 }
 0x24a   :  { %v360_v0 = vpop.f32.mrf.mxu2 }
 0x24b   :  { %v382_v1 = vmul.f32 0.17677669, %v360_v0 }
 0x24d   :  { %398 = vst [vmem:[#allocation11 + $0x68] sm:$0xff] %v382_v1 }
 0x252   :  { %v363_v2 = vpop.f32.mrf.mxu2 }
 0x253   :  { %v383_v3 = vmul.f32 0.17677669, %v363_v2 }
 0x255   :  { %399 = vst [vmem:[#allocation11 + $0x70] sm:$0xff] %v383_v3 }
 0x25a   :  { %v366_v4 = vpop.f32.mrf.mxu2 }
 0x25b   :  { %v384_v5 = vmul.f32 0.17677669, %v366_v4 }
 0x25d   :  { %400 = vst [vmem:[#allocation11 + $0x78] sm:$0xff] %v384_v5 }
 0x25e   :  { %533 = dma.vmem_to_hbm [thread:$0]  %s526_s8, 2048, %s528_s21, [#allocation4], %s809_s1, %s809_s1, %s810_s20  }
 0x25f   :  { %801 = dma.done.wait [#allocation4], 2048  }
 0x260   :  { %802 = vsyncadd [#allocation4], 4294965248 }
 0x261   :  { %803 = dma.done.wait [#allocation13], 2064  }
 0x262   :  { %804 = vsyncadd [#allocation13], 4294965232 }
 0x263   :  { %570 = vsyncpa [#allocation3], 1 }
 0x264   :  { %571 = vsyncpa [#allocation6], 1 }
 0x265   :  { %572 = vsyncpa [#allocation9], 1 }
 0x266   :  { %573 = vsyncpa [#allocation4], 1 }
 0x267   :  { %574 = vsyncpa [#allocation13], 1 }

</bundles_post_ra>
